<compile_context>
chip_gen: v7x
topology: tpu7x:2x2x1
jax: 0.10.0
libtpu: 0.0.40
codegen_flags: <defaults>
</compile_context>

<pallas_src>
import functools

import jax
import jax.numpy as jnp
from jax.experimental import pallas as pl
from jax.experimental.pallas import tpu as pltpu


def _gconv1d_kernel(x_ref, w_ref, b_ref, alpha_ref, out_ref, xpad_ref, xcol_ref,
                    *, kwidth, stride, pad_l, pad_r, l_out, b_blk):
    # x_ref:     (b_blk, C_in, L)        unpadded input block (compute dtype)
    # w_ref:     (F, K*C_in)             pre-transposed conv weights
    # b_ref:     (F, 1)                  conv bias (f32)
    # alpha_ref: (F, 1)                  PReLU per-channel slope (f32)
    # out_ref:   (1, F, b_blk*L_out)     activated output
    # xpad_ref:  (b_blk, C_in, L_pad)    VMEM scratch: reflect-padded input
    # xcol_ref:  (K*C_in, b_blk*L_out)   VMEM scratch: im2col buffer
    c_in = x_ref.shape[1]
    length = x_ref.shape[2]

    x = x_ref[...]

    # ---- in-kernel reflect pad (no padded copy of x ever hits HBM) ----
    xpad_ref[:, :, pad_l:pad_l + length] = x
    for j in range(pad_l):                       # padded[j] = x[pad_l - j]
        xpad_ref[:, :, j:j + 1] = x[:, :, pad_l - j:pad_l - j + 1]
    for j in range(pad_r):                       # padded[pad_l+L+j] = x[L-2-j]
        xpad_ref[:, :, pad_l + length + j:pad_l + length + j + 1] = (
            x[:, :, length - 2 - j:length - 2 - j + 1])

    # ---- im2col: xcol[k*C_in + c, b*L_out + t] = xpad[b, c, t*stride + k] ----
    for b in range(b_blk):
        for k in range(kwidth):
            if stride == 1:
                col = xpad_ref[b, :, k:k + l_out]
            else:
                col = xpad_ref[b, :, pl.ds(k, l_out, stride=stride)]
            xcol_ref[k * c_in:(k + 1) * c_in, b * l_out:(b + 1) * l_out] = col

    # ---- single MXU contraction over K*C_in, f32 accumulation ----
    acc = jnp.dot(w_ref[...], xcol_ref[...], preferred_element_type=jnp.float32)
    a = acc + b_ref[...]                            # bias broadcast over lanes
    h = jnp.where(a >= 0, a, alpha_ref[...] * a)    # per-channel PReLU
    out_ref[0] = h.astype(out_ref.dtype)


def gconv1d_block(x, w, b, alpha, *, stride=1, compute_dtype=None):
    """x: (N, C_in, L)  w: (F, C_in, K)  b: (F,)  alpha: (F,) -> (N, F, L_out)."""
    n, c_in, length = x.shape
    f_out, _, kwidth = w.shape

    if stride > 1:
        pad_l, pad_r = kwidth // 2 - 1, kwidth // 2
    else:
        pad_l, pad_r = kwidth // 2, kwidth // 2
    l_pad = length + pad_l + pad_r
    l_out = (l_pad - kwidth) // stride + 1

    out_dtype = x.dtype
    cdt = compute_dtype if compute_dtype is not None else x.dtype

    # Pack batch elements per grid step so the output last dim is lane-dense
    # (aims for >=128 lanes; capped at 8 batch elems per step).
    b_blk = max(1, min(n, 8, pl.cdiv(128, max(l_out, 1))))
    n_blocks = pl.cdiv(n, b_blk)
    n_padded = n_blocks * b_blk
    if n_padded != n:
        x = jnp.pad(x, ((0, n_padded - n), (0, 0), (0, 0)))

    x_c = x.astype(cdt)
    # w_mat[f, k*C_in + c] = w[f, c, k]  (matches im2col row ordering)
    w_mat = jnp.transpose(w, (0, 2, 1)).reshape(f_out, kwidth * c_in).astype(cdt)
    b2 = b.reshape(f_out, 1).astype(jnp.float32)
    alpha2 = alpha.reshape(f_out, 1).astype(jnp.float32)

    kernel = functools.partial(
        _gconv1d_kernel, kwidth=kwidth, stride=stride,
        pad_l=pad_l, pad_r=pad_r, l_out=l_out, b_blk=b_blk)

    out_packed = pl.pallas_call(
        kernel,
        out_shape=jax.ShapeDtypeStruct((n_blocks, f_out, b_blk * l_out), out_dtype),
        grid=(n_blocks,),
        in_specs=[
            pl.BlockSpec((b_blk, c_in, length), lambda i: (i, 0, 0)),
            pl.BlockSpec((f_out, kwidth * c_in), lambda i: (0, 0)),
            pl.BlockSpec((f_out, 1), lambda i: (0, 0)),
            pl.BlockSpec((f_out, 1), lambda i: (0, 0)),
        ],
        out_specs=pl.BlockSpec((1, f_out, b_blk * l_out), lambda i: (i, 0, 0)),
        scratch_shapes=[
            pltpu.VMEM((b_blk, c_in, l_pad), cdt),           # reflect-padded x
            pltpu.VMEM((kwidth * c_in, b_blk * l_out), cdt),  # im2col buffer
        ],
        compiler_params=pltpu.CompilerParams(dimension_semantics=("parallel",)),
    )(x_c, w_mat, b2, alpha2)

    # Un-pack the lane-dense layout: (nb, F, b_blk*L_out) -> (N, F, L_out).
    out = out_packed.reshape(n_blocks, f_out, b_blk, l_out)
    out = jnp.transpose(out, (0, 2, 1, 3)).reshape(n_padded, f_out, l_out)
    return out[:n]


def reference(x, w, b, alpha, *, stride=1):
    """Pure-JAX reference of the same forward pass (sanity check)."""
    n, c_in, length = x.shape
    f_out, _, kwidth = w.shape
    if stride > 1:
        pad = (kwidth // 2 - 1, kwidth // 2)
    else:
        pad = (kwidth // 2, kwidth // 2)
    x_p = jnp.pad(x, ((0, 0), (0, 0), pad), mode="reflect")
    a = jax.lax.conv_general_dilated(
        x_p, w, window_strides=(stride,), padding="VALID",
        dimension_numbers=("NCH", "OIH", "NCH"))
    a = a + b.reshape(1, f_out, 1)
    return jnp.where(a >= 0, a, alpha.reshape(1, f_out, 1) * a)


if __name__ == "__main__":
    # Module config: GConv1DBlock(ninp=4, fmaps=8, kwidth=5, stride=1,
    #                             bias=True, norm_type=None)
    ninp, fmaps, kwidth, stride = 4, 8, 5, 1
    batch, seqlen = 2, 16

    key = jax.random.PRNGKey(0)
    kx, kw, kb, ka = jax.random.split(key, 4)

    x = jax.random.normal(kx, (batch, ninp, seqlen), dtype=jnp.float32)
    w = jax.random.normal(kw, (fmaps, ninp, kwidth), dtype=jnp.float32) * 0.1
    b = jax.random.normal(kb, (fmaps,), dtype=jnp.float32) * 0.1
    alpha = jnp.zeros((fmaps,), dtype=jnp.float32)   # PReLU(fmaps, init=0)

    out = jax.block_until_ready(gconv1d_block(x, w, b, alpha, stride=stride))
    ref = jax.block_until_ready(reference(x, w, b, alpha, stride=stride))
    assert out.shape == (batch, fmaps, seqlen), out.shape
    assert jnp.allclose(out, ref, atol=1e-5, rtol=1e-5), float(jnp.abs(out - ref).max())

    # Second case: exercises batch packing with padding (N=5 -> b_blk=4, 2 grid
    # steps), nonzero PReLU slopes, and the bf16 compute path (f32 accumulate).
    batch2, seq2 = 5, 40
    kx2, kw2, kb2, ka2 = jax.random.split(jax.random.PRNGKey(1), 4)
    x2 = jax.random.normal(kx2, (batch2, ninp, seq2), dtype=jnp.float32)
    w2 = jax.random.normal(kw2, (fmaps, ninp, kwidth), dtype=jnp.float32) * 0.1
    b2 = jax.random.normal(kb2, (fmaps,), dtype=jnp.float32) * 0.1
    alpha2 = jax.random.normal(ka2, (fmaps,), dtype=jnp.float32) * 0.1

    out2 = jax.block_until_ready(gconv1d_block(x2, w2, b2, alpha2, stride=stride))
    ref2 = jax.block_until_ready(reference(x2, w2, b2, alpha2, stride=stride))
    assert out2.shape == (batch2, fmaps, seq2), out2.shape
    assert jnp.allclose(out2, ref2, atol=1e-5, rtol=1e-5), float(jnp.abs(out2 - ref2).max())

    out2_bf16 = jax.block_until_ready(
        gconv1d_block(x2, w2, b2, alpha2, stride=stride, compute_dtype=jnp.bfloat16))
    assert jnp.allclose(out2_bf16, ref2, atol=5e-2, rtol=5e-2), \
        float(jnp.abs(out2_bf16 - ref2).max())

    print("KERNEL_OK")
</pallas_src>

<mosaic_0001>
module attributes {stable_mosaic.version = 11 : i64} {
  func.func @_gconv1d_kernel(%arg0: i32, %arg1: memref<2x4x16xf32, #tpu.memory_space<vmem>>, %arg2: memref<8x20xf32, #tpu.memory_space<vmem>>, %arg3: memref<8x1xf32, #tpu.memory_space<vmem>>, %arg4: memref<8x1xf32, #tpu.memory_space<vmem>>, %arg5: memref<1x8x32xf32, #tpu.memory_space<vmem>>, %arg6: memref<2x4x20xf32, #tpu.memory_space<vmem>>, %arg7: memref<20x32xf32, #tpu.memory_space<vmem>>) attributes {dimension_semantics = [#tpu.dimension_semantics<parallel>], iteration_bounds = array<i64: 1>, scalar_prefetch = 0 : i64, scratch_operands = 2 : i64, tpu.core_type = #tpu.core_type<tc>, window_params = [{transform_indices = @transform_0, window_bounds = array<i64: 2, 4, 16>}, {pipeline_mode = #tpu.pipeline_mode<synchronous>, transform_indices = @transform_1, window_bounds = array<i64: 8, 20>}, {pipeline_mode = #tpu.pipeline_mode<synchronous>, transform_indices = @transform_2, window_bounds = array<i64: 8, 1>}, {pipeline_mode = #tpu.pipeline_mode<synchronous>, transform_indices = @transform_3, window_bounds = array<i64: 8, 1>}, {transform_indices = @transform_4, window_bounds = array<i64: 1, 8, 32>}]} {
    %c0 = arith.constant 0 : index
    %c0_0 = arith.constant 0 : index
    %c0_1 = arith.constant 0 : index
    %0 = vector.load %arg1[%c0, %c0_0, %c0_1] : memref<2x4x16xf32, #tpu.memory_space<vmem>>, vector<2x4x16xf32>
    %c0_2 = arith.constant 0 : index
    %c0_3 = arith.constant 0 : index
    %c2 = arith.constant 2 : index
    %1 = vector.load %arg6[%c0_2, %c0_3, %c2] : memref<2x4x20xf32, #tpu.memory_space<vmem>>, vector<2x4x16xf32>
    tpu.vector_store %arg6[%c0_2, %c0_3, %c2], %0 {strides = array<i32>} : memref<2x4x20xf32, #tpu.memory_space<vmem>>, vector<2x4x16xf32>,
    %2 = vector.extract_strided_slice %0 {offsets = [0, 0, 2], sizes = [2, 4, 1], strides = [1, 1, 1]} : vector<2x4x16xf32> to vector<2x4x1xf32>
    %c0_4 = arith.constant 0 : index
    %c0_5 = arith.constant 0 : index
    %c0_6 = arith.constant 0 : index
    %3 = vector.load %arg6[%c0_4, %c0_5, %c0_6] : memref<2x4x20xf32, #tpu.memory_space<vmem>>, vector<2x4x1xf32>
    tpu.vector_store %arg6[%c0_4, %c0_5, %c0_6], %2 {strides = array<i32>} : memref<2x4x20xf32, #tpu.memory_space<vmem>>, vector<2x4x1xf32>,
    %4 = vector.extract_strided_slice %0 {offsets = [0, 0, 1], sizes = [2, 4, 1], strides = [1, 1, 1]} : vector<2x4x16xf32> to vector<2x4x1xf32>
    %c0_7 = arith.constant 0 : index
    %c0_8 = arith.constant 0 : index
    %c1 = arith.constant 1 : index
    %5 = vector.load %arg6[%c0_7, %c0_8, %c1] : memref<2x4x20xf32, #tpu.memory_space<vmem>>, vector<2x4x1xf32>
    tpu.vector_store %arg6[%c0_7, %c0_8, %c1], %4 {strides = array<i32>} : memref<2x4x20xf32, #tpu.memory_space<vmem>>, vector<2x4x1xf32>,
    %6 = vector.extract_strided_slice %0 {offsets = [0, 0, 14], sizes = [2, 4, 1], strides = [1, 1, 1]} : vector<2x4x16xf32> to vector<2x4x1xf32>
    %c0_9 = arith.constant 0 : index
    %c0_10 = arith.constant 0 : index
    %c18 = arith.constant 18 : index
    %7 = vector.load %arg6[%c0_9, %c0_10, %c18] : memref<2x4x20xf32, #tpu.memory_space<vmem>>, vector<2x4x1xf32>
    tpu.vector_store %arg6[%c0_9, %c0_10, %c18], %6 {strides = array<i32>} : memref<2x4x20xf32, #tpu.memory_space<vmem>>, vector<2x4x1xf32>,
    %8 = vector.extract_strided_slice %0 {offsets = [0, 0, 13], sizes = [2, 4, 1], strides = [1, 1, 1]} : vector<2x4x16xf32> to vector<2x4x1xf32>
    %c0_11 = arith.constant 0 : index
    %c0_12 = arith.constant 0 : index
    %c19 = arith.constant 19 : index
    %9 = vector.load %arg6[%c0_11, %c0_12, %c19] : memref<2x4x20xf32, #tpu.memory_space<vmem>>, vector<2x4x1xf32>
    tpu.vector_store %arg6[%c0_11, %c0_12, %c19], %8 {strides = array<i32>} : memref<2x4x20xf32, #tpu.memory_space<vmem>>, vector<2x4x1xf32>,
    %c0_13 = arith.constant 0 : index
    %c0_14 = arith.constant 0 : index
    %c0_15 = arith.constant 0 : index
    %10 = vector.load %arg6[%c0_13, %c0_14, %c0_15] : memref<2x4x20xf32, #tpu.memory_space<vmem>>, vector<1x4x16xf32>
    %11 = vector.shape_cast %10 : vector<1x4x16xf32> to vector<4x16xf32>
    %c0_16 = arith.constant 0 : index
    %c0_17 = arith.constant 0 : index
    %12 = vector.load %arg7[%c0_16, %c0_17] : memref<20x32xf32, #tpu.memory_space<vmem>>, vector<4x16xf32>
    tpu.vector_store %arg7[%c0_16, %c0_17], %11 {strides = array<i32>} : memref<20x32xf32, #tpu.memory_space<vmem>>, vector<4x16xf32>,
    %c0_18 = arith.constant 0 : index
    %c0_19 = arith.constant 0 : index
    %c1_20 = arith.constant 1 : index
    %13 = vector.load %arg6[%c0_18, %c0_19, %c1_20] : memref<2x4x20xf32, #tpu.memory_space<vmem>>, vector<1x4x16xf32>
    %14 = vector.shape_cast %13 : vector<1x4x16xf32> to vector<4x16xf32>
    %c4 = arith.constant 4 : index
    %c0_21 = arith.constant 0 : index
    %15 = vector.load %arg7[%c4, %c0_21] : memref<20x32xf32, #tpu.memory_space<vmem>>, vector<4x16xf32>
    tpu.vector_store %arg7[%c4, %c0_21], %14 {strides = array<i32>} : memref<20x32xf32, #tpu.memory_space<vmem>>, vector<4x16xf32>,
    %c0_22 = arith.constant 0 : index
    %c0_23 = arith.constant 0 : index
    %c2_24 = arith.constant 2 : index
    %16 = vector.load %arg6[%c0_22, %c0_23, %c2_24] : memref<2x4x20xf32, #tpu.memory_space<vmem>>, vector<1x4x16xf32>
    %17 = vector.shape_cast %16 : vector<1x4x16xf32> to vector<4x16xf32>
    %c8 = arith.constant 8 : index
    %c0_25 = arith.constant 0 : index
    %18 = vector.load %arg7[%c8, %c0_25] : memref<20x32xf32, #tpu.memory_space<vmem>>, vector<4x16xf32>
    tpu.vector_store %arg7[%c8, %c0_25], %17 {strides = array<i32>} : memref<20x32xf32, #tpu.memory_space<vmem>>, vector<4x16xf32>,
    %c0_26 = arith.constant 0 : index
    %c0_27 = arith.constant 0 : index
    %c3 = arith.constant 3 : index
    %19 = vector.load %arg6[%c0_26, %c0_27, %c3] : memref<2x4x20xf32, #tpu.memory_space<vmem>>, vector<1x4x16xf32>
    %20 = vector.shape_cast %19 : vector<1x4x16xf32> to vector<4x16xf32>
    %c12 = arith.constant 12 : index
    %c0_28 = arith.constant 0 : index
    %21 = vector.load %arg7[%c12, %c0_28] : memref<20x32xf32, #tpu.memory_space<vmem>>, vector<4x16xf32>
    tpu.vector_store %arg7[%c12, %c0_28], %20 {strides = array<i32>} : memref<20x32xf32, #tpu.memory_space<vmem>>, vector<4x16xf32>,
    %c0_29 = arith.constant 0 : index
    %c0_30 = arith.constant 0 : index
    %c4_31 = arith.constant 4 : index
    %22 = vector.load %arg6[%c0_29, %c0_30, %c4_31] : memref<2x4x20xf32, #tpu.memory_space<vmem>>, vector<1x4x16xf32>
    %23 = vector.shape_cast %22 : vector<1x4x16xf32> to vector<4x16xf32>
    %c16 = arith.constant 16 : index
    %c0_32 = arith.constant 0 : index
    %24 = vector.load %arg7[%c16, %c0_32] : memref<20x32xf32, #tpu.memory_space<vmem>>, vector<4x16xf32>
    tpu.vector_store %arg7[%c16, %c0_32], %23 {strides = array<i32>} : memref<20x32xf32, #tpu.memory_space<vmem>>, vector<4x16xf32>,
    %c1_33 = arith.constant 1 : index
    %c0_34 = arith.constant 0 : index
    %c0_35 = arith.constant 0 : index
    %25 = vector.load %arg6[%c1_33, %c0_34, %c0_35] : memref<2x4x20xf32, #tpu.memory_space<vmem>>, vector<1x4x16xf32>
    %26 = vector.shape_cast %25 : vector<1x4x16xf32> to vector<4x16xf32>
    %c0_36 = arith.constant 0 : index
    %c16_37 = arith.constant 16 : index
    %27 = vector.load %arg7[%c0_36, %c16_37] : memref<20x32xf32, #tpu.memory_space<vmem>>, vector<4x16xf32>
    tpu.vector_store %arg7[%c0_36, %c16_37], %26 {strides = array<i32>} : memref<20x32xf32, #tpu.memory_space<vmem>>, vector<4x16xf32>,
    %c1_38 = arith.constant 1 : index
    %c0_39 = arith.constant 0 : index
    %c1_40 = arith.constant 1 : index
    %28 = vector.load %arg6[%c1_38, %c0_39, %c1_40] : memref<2x4x20xf32, #tpu.memory_space<vmem>>, vector<1x4x16xf32>
    %29 = vector.shape_cast %28 : vector<1x4x16xf32> to vector<4x16xf32>
    %c4_41 = arith.constant 4 : index
    %c16_42 = arith.constant 16 : index
    %30 = vector.load %arg7[%c4_41, %c16_42] : memref<20x32xf32, #tpu.memory_space<vmem>>, vector<4x16xf32>
    tpu.vector_store %arg7[%c4_41, %c16_42], %29 {strides = array<i32>} : memref<20x32xf32, #tpu.memory_space<vmem>>, vector<4x16xf32>,
    %c1_43 = arith.constant 1 : index
    %c0_44 = arith.constant 0 : index
    %c2_45 = arith.constant 2 : index
    %31 = vector.load %arg6[%c1_43, %c0_44, %c2_45] : memref<2x4x20xf32, #tpu.memory_space<vmem>>, vector<1x4x16xf32>
    %32 = vector.shape_cast %31 : vector<1x4x16xf32> to vector<4x16xf32>
    %c8_46 = arith.constant 8 : index
    %c16_47 = arith.constant 16 : index
    %33 = vector.load %arg7[%c8_46, %c16_47] : memref<20x32xf32, #tpu.memory_space<vmem>>, vector<4x16xf32>
    tpu.vector_store %arg7[%c8_46, %c16_47], %32 {strides = array<i32>} : memref<20x32xf32, #tpu.memory_space<vmem>>, vector<4x16xf32>,
    %c1_48 = arith.constant 1 : index
    %c0_49 = arith.constant 0 : index
    %c3_50 = arith.constant 3 : index
    %34 = vector.load %arg6[%c1_48, %c0_49, %c3_50] : memref<2x4x20xf32, #tpu.memory_space<vmem>>, vector<1x4x16xf32>
    %35 = vector.shape_cast %34 : vector<1x4x16xf32> to vector<4x16xf32>
    %c12_51 = arith.constant 12 : index
    %c16_52 = arith.constant 16 : index
    %36 = vector.load %arg7[%c12_51, %c16_52] : memref<20x32xf32, #tpu.memory_space<vmem>>, vector<4x16xf32>
    tpu.vector_store %arg7[%c12_51, %c16_52], %35 {strides = array<i32>} : memref<20x32xf32, #tpu.memory_space<vmem>>, vector<4x16xf32>,
    %c1_53 = arith.constant 1 : index
    %c0_54 = arith.constant 0 : index
    %c4_55 = arith.constant 4 : index
    %37 = vector.load %arg6[%c1_53, %c0_54, %c4_55] : memref<2x4x20xf32, #tpu.memory_space<vmem>>, vector<1x4x16xf32>
    %38 = vector.shape_cast %37 : vector<1x4x16xf32> to vector<4x16xf32>
    %c16_56 = arith.constant 16 : index
    %c16_57 = arith.constant 16 : index
    %39 = vector.load %arg7[%c16_56, %c16_57] : memref<20x32xf32, #tpu.memory_space<vmem>>, vector<4x16xf32>
    tpu.vector_store %arg7[%c16_56, %c16_57], %38 {strides = array<i32>} : memref<20x32xf32, #tpu.memory_space<vmem>>, vector<4x16xf32>,
    %c0_58 = arith.constant 0 : index
    %c0_59 = arith.constant 0 : index
    %40 = vector.load %arg2[%c0_58, %c0_59] : memref<8x20xf32, #tpu.memory_space<vmem>>, vector<8x20xf32>
    %c0_60 = arith.constant 0 : index
    %c0_61 = arith.constant 0 : index
    %41 = vector.load %arg7[%c0_60, %c0_61] : memref<20x32xf32, #tpu.memory_space<vmem>>, vector<20x32xf32>
    %cst = arith.constant dense<0.000000e+00> : vector<8x32xf32>
    %42 = tpu.matmul %40, %41, %cst {dimension_numbers = #tpu.dot_dimension_numbers<[1], [0], [0], [1], [0, 0, 1, 1], [], []>} : vector<8x20xf32>, vector<20x32xf32>, vector<8x32xf32> -> vector<8x32xf32>
    %c0_62 = arith.constant 0 : index
    %c0_63 = arith.constant 0 : index
    %43 = vector.load %arg3[%c0_62, %c0_63] : memref<8x1xf32, #tpu.memory_space<vmem>>, vector<8x1xf32>
    %44 = vector.broadcast %43 : vector<8x1xf32> to vector<8x32xf32>
    %45 = arith.addf %42, %44 : vector<8x32xf32>
    %cst_64 = arith.constant 0.000000e+00 : f32
    %46 = vector.broadcast %cst_64 : f32 to vector<8x32xf32>
    %47 = arith.cmpf oge, %45, %46 : vector<8x32xf32>
    %c0_65 = arith.constant 0 : index
    %c0_66 = arith.constant 0 : index
    %48 = vector.load %arg4[%c0_65, %c0_66] : memref<8x1xf32, #tpu.memory_space<vmem>>, vector<8x1xf32>
    %49 = vector.broadcast %48 : vector<8x1xf32> to vector<8x32xf32>
    %50 = arith.mulf %49, %45 : vector<8x32xf32>
    %51 = arith.select %47, %45, %50 : vector<8x32xi1>, vector<8x32xf32>
    %c0_67 = arith.constant 0 : index
    %c0_68 = arith.constant 0 : index
    %c0_69 = arith.constant 0 : index
    %52 = vector.load %arg5[%c0_67, %c0_68, %c0_69] : memref<1x8x32xf32, #tpu.memory_space<vmem>>, vector<1x8x32xf32>
    %53 = vector.shape_cast %52 : vector<1x8x32xf32> to vector<8x32xf32>
    %54 = vector.shape_cast %51 : vector<8x32xf32> to vector<1x8x32xf32>
    tpu.vector_store %arg5[%c0_67, %c0_68, %c0_69], %54 {strides = array<i32>} : memref<1x8x32xf32, #tpu.memory_space<vmem>>, vector<1x8x32xf32>,
    return
  }
  func.func @transform_0(%arg0: i32) -> (i32, i32, i32) {
    %c0_i32 = arith.constant 0 : i32
    %c0_i32_0 = arith.constant 0 : i32
    %c0_i32_1 = arith.constant 0 : i32
    return %arg0, %c0_i32, %c0_i32_0 : i32, i32, i32
  }
  func.func @transform_1(%arg0: i32) -> (i32, i32) {
    %c0_i32 = arith.constant 0 : i32
    %c0_i32_0 = arith.constant 0 : i32
    %c0_i32_1 = arith.constant 0 : i32
    return %c0_i32, %c0_i32_0 : i32, i32
  }
  func.func @transform_2(%arg0: i32) -> (i32, i32) {
    %c0_i32 = arith.constant 0 : i32
    %c0_i32_0 = arith.constant 0 : i32
    %c0_i32_1 = arith.constant 0 : i32
    return %c0_i32, %c0_i32_0 : i32, i32
  }
  func.func @transform_3(%arg0: i32) -> (i32, i32) {
    %c0_i32 = arith.constant 0 : i32
    %c0_i32_0 = arith.constant 0 : i32
    %c0_i32_1 = arith.constant 0 : i32
    return %c0_i32, %c0_i32_0 : i32, i32
  }
  func.func @transform_4(%arg0: i32) -> (i32, i32, i32) {
    %c0_i32 = arith.constant 0 : i32
    %c0_i32_0 = arith.constant 0 : i32
    %c0_i32_1 = arith.constant 0 : i32
    return %arg0, %c0_i32, %c0_i32_0 : i32, i32, i32
  }
}

</mosaic_0001>

<bundles_post_ra>
// kernel: tpu_custom_call.1
= control target key start
LH: loop header
LB: loop body
LE: loop exit
PB: predicated region body
PF: predicated region fallthrough
CT: control target
= control target key end

     0   :  { %s294_s17 = smov 2   ;;  %s295_s18 = smov 126   ;;  %s371_s0 = inlined_call_operand.vmem [shape: f32[2,4,16], index: 0, kind: input, shape index: {}]   ;;  %s372_s1 = inlined_call_operand.vmem [shape: f32[8,20], index: 1, kind: input, shape index: {}]   ;;  %s373_s2 = inlined_call_operand.vmem [shape: f32[8,1], index: 2, kind: input, shape index: {}]   ;;  %s374_s3 = inlined_call_operand.vmem [shape: f32[8,1], index: 3, kind: input, shape index: {}]   ;;  %s375_s4 = inlined_call_operand.hbm [shape: f32[1,8,32], index: 4, kind: output, shape index: {}]  }
   0x1   :  { %v18_v0 = vld [vmem:[%s371_s0] sm:$0xf]  ;;  %v19_v1 = vld [vmem:[%s371_s0 + $0x4] sm:$0xf] }
   0x2   :  { %22 = vrot.lane.b32.xlu0 %v18_v0, %s294_s17  ;;  %31 = vrot.lane.b32.xlu1 %v18_v0, %s295_s18 }
   0x3   :  { %9 = vsyncpa [#allocation5], 0  ;;  %s296_s21 = smov 4   ;;  %s297_s22 = smov 6   ;;  %vm28_vm0 = vcmask 142352   ;;  %vm37_vm1 = vcmask 3072  }
   0x4   :  { %vm40_vm2 = vcmask 11272   ;;  %vm49_vm3 = vcmask 150672   ;;  %vm58_vm4 = vcmask 158872   ;;  %s298_s0 = smov 127   ;;  %vm62_vm5 = vcmask 125952   ;;  %s299_s23 = smov 16  }
   0x5   :  { %s300_s24 = smov 125   ;;  %v301_v17 = vmov 0.0|0.0   ;;  %s302_s25 = smov 14   ;;  %vm306_vm6 = vmmov 0   ;;  %v307_v20 = vmov 0.0   ;;  %v124_v21 = vld [vmem:[%s373_s2] sm:$0xff] }
   0x6   :  { %24 = vrot.lane.b32.xlu0 %v19_v1, %s294_s17  ;;  %33 = vrot.lane.b32.xlu1 %v19_v1, %s295_s18  ;;  %s303_s26 = smov 15   ;;  %s304_s27 = smov 124   ;;  %v308_v23 = vmov 0   ;;  %v209_v24 = vld [vmem:[%s374_s3] sm:$0xff]  ;;  %vm94_vm7 = vcmask 257152   ;;  %vm134_vm8 = vcmask 1043456  }
   0x7   :  { %248 = vmatprep.subr.bf16.mxu0 %v301_v17  ;;  %s305_s28 = smov 13   ;;  %245 = vmatprep.mubr.msk.f32.mxu0 %vm306_vm6, %v307_v20  ;;  %s309_s5 = smov 12   ;;  %v120_v37 = vld [vmem:[%s372_s1] sm:$0xff]  ;;  %vm130_vm9 = vcmask 162816   ;;  %vm217_vm11 = vcmask 261120  }
   0x8   :  { %268 = vset.pattern.permute.xlu1 %v308_v23  ;;  %269 = vset.pattern.permute.xlu0 %v308_v23  ;;  %s310_s8 = smov [#allocation4]  }
   0x9   :  { %s225_s9 = sshll.u32 %s310_s8, 4  ;;  %s226_s9 = int_to_ptr.vmem [resolvable:$true] %s225_s9 }
   0xa   :  { %43 = vrot.lane.b32.xlu0 %v18_v0, %s296_s21  ;;  %45 = vrot.lane.b32.xlu1 %v19_v1, %s296_s21  ;;  %s270_s10 = scalar_lea.vmem %s226_s9, 128  ;;  %p275_p1 = scmp.lt.s32.totalorder %s226_s9, %s226_s9 }
   0xb   :  { %p271_p0 = scmp.ne.s32.totalorder %s226_s9, %s270_s10  ;;  %p276_p2 = scmp.lt.s32.totalorder %s270_s10, %s270_s10 }
   0xd   :  { %p277_p3 = por %p276_p2, %p275_p1 }
   0xe   :  { %52 = vrot.lane.b32.xlu0 %v18_v0, %s297_s22  ;;  %54 = vrot.lane.b32.xlu1 %v19_v1, %s297_s22 }
   0xf   :  { %p278_p4 = pnand %p277_p3, %p271_p0 }
  0x74   :  { %v23_v2 = vpop.permute.xlu0 %22  ;;  %v32_v3 = vpop.permute.xlu1 %31 }
  0x75   :  { %29 = vst.msk [vmem:[#allocation2] sm:$0xf] %vm28_vm0, %v23_v2 }
  0x76   :  { %38 = vst.msk [vmem:[#allocation2] sm:$0xf] %vm37_vm1, %v32_v3 }
  0x77   :  { %41 = vst.msk [vmem:[#allocation2] sm:$0xf] %vm40_vm2, %v18_v0 }
  0x78   :  { %v25_v4 = vpop.permute.xlu0 %24  ;;  %v34_v5 = vpop.permute.xlu1 %33 }
  0x79   :  { %30 = vst.msk [vmem:[#allocation2 + $0x4] sm:$0xf] %vm28_vm0, %v25_v4 }
  0x7a   :  { %39 = vst.msk [vmem:[#allocation2 + $0x4] sm:$0xf] %vm37_vm1, %v34_v5 }
  0x7b   :  { %42 = vst.msk [vmem:[#allocation2 + $0x4] sm:$0xf] %vm40_vm2, %v19_v1 }
  0x7c   :  { %v44_v6 = vpop.permute.xlu0 %43  ;;  %v46_v7 = vpop.permute.xlu1 %45 }
  0x7d   :  { %50 = vst.msk [vmem:[#allocation2] sm:$0xf] %vm49_vm3, %v44_v6  ;;  %51 = vst.msk [vmem:[#allocation2 + $0x4] sm:$0xf] %vm49_vm3, %v46_v7 }
  0x80   :  { %v53_v8 = vpop.permute.xlu0 %52  ;;  %v55_v9 = vpop.permute.xlu1 %54 }
  0x81   :  { %59 = vst.msk [vmem:[#allocation2] sm:$0xf] %vm58_vm4, %v53_v8  ;;  %60 = vst.msk [vmem:[#allocation2 + $0x4] sm:$0xf] %vm58_vm4, %v55_v9 }
  0x88   :  { %v70_v10 = vld [vmem:[#allocation2] sm:$0xf]  ;;  %v89_v12 = vld [vmem:[#allocation2 + $0x4] sm:$0xf] }
  0x89   :  { %v64_v11 = vld [vmem:[#allocation2] sm:$0xf]  ;;  %72 = vrot.lane.b32.xlu1 %v70_v10, %s295_s18  ;;  %v102_v15 = vld [vmem:[#allocation2 + $0x4] sm:$0xf] }
  0x8a   :  { %66 = vrot.lane.b32.xlu0 %v64_v11, %s298_s0  ;;  %v61_v13 = vld [vmem:[#allocation2] sm:$0xf]  ;;  %v96_v16 = vld [vmem:[#allocation2 + $0x4] sm:$0xf] }
  0x8b   :  { %v76_v14 = vld [vmem:[#allocation2] sm:$0xf]  ;;  %63 = vst.msk [vmem:[#allocation3] sm:$0xf] %vm62_vm5, %v61_v13  ;;  %v108_v19 = vld [vmem:[#allocation2 + $0x4] sm:$0xf] }
  0x8c   :  { %v82_v18 = vld [vmem:[#allocation2] sm:$0xf]  ;;  %v114_v22 = vld [vmem:[#allocation2 + $0x4] sm:$0xf] }
  0x8d   :  { %91 = vrot.lane.b32.xlu1 %v89_v12, %s299_s23 }
  0x8e   :  { %78 = vrot.lane.b32.xlu0 %v76_v14, %s300_s24 }
  0x91   :  { %104 = vrot.lane.b32.xlu1 %v102_v15, %s302_s25 }
  0x92   :  { %98 = vrot.lane.b32.xlu0 %v96_v16, %s303_s26 }
  0x95   :  { %84 = vrot.lane.b32.xlu1 %v82_v18, %s304_s27 }
  0x96   :  { %110 = vrot.lane.b32.xlu0 %v108_v19, %s305_s28 }
  0x99   :  { %127 = vperm.xlu1 %268, %v124_v21  }
  0x9a   :  { %116 = vrot.lane.b32.xlu0 %v114_v22, %s309_s5 }
  0x9e   :  { %212 = vperm.xlu0 %269, %v209_v24  }
  0xfb   :  { %v73_v25 = vpop.permute.xlu1 %72 }
  0xfc   :  { %v67_v26 = vpop.permute.xlu0 %66  ;;  %75 = vst.msk [vmem:[#allocation3 + $0x8] sm:$0xf] %vm62_vm5, %v73_v25 }
  0xfd   :  { %69 = vst.msk [vmem:[#allocation3 + $0x4] sm:$0xf] %vm62_vm5, %v67_v26 }
  0xff   :  { %v92_v27 = vpop.permute.xlu1 %91 }
 0x100   :  { %v79_v28 = vpop.permute.xlu0 %78  ;;  %95 = vst.msk [vmem:[#allocation3] sm:$0xf] %vm94_vm7, %v92_v27 }
 0x101   :  { %81 = vst.msk [vmem:[#allocation3 + $0xc] sm:$0xf] %vm62_vm5, %v79_v28 }
 0x103   :  { %v105_v29 = vpop.permute.xlu1 %104 }
 0x104   :  { %v99_v30 = vpop.permute.xlu0 %98  ;;  %107 = vst.msk [vmem:[#allocation3 + $0x8] sm:$0xf] %vm94_vm7, %v105_v29 }
 0x105   :  { %101 = vst.msk [vmem:[#allocation3 + $0x4] sm:$0xf] %vm94_vm7, %v99_v30 }
 0x107   :  { %v85_v31 = vpop.permute.xlu1 %84 }
 0x108   :  { %v111_v32 = vpop.permute.xlu0 %110  ;;  %87 = vst.msk [vmem:[#allocation3 + $0x10] sm:$0xf] %vm62_vm5, %v85_v31 }
 0x109   :  { %113 = vst.msk [vmem:[#allocation3 + $0xc] sm:$0xf] %vm94_vm7, %v111_v32 }
 0x10c   :  { %v117_v33 = vpop.permute.xlu0 %116  ;;  %v121_v34 = vld [vmem:[#allocation3] sm:$0xff] }
 0x10d   :  { %119 = vst.msk [vmem:[#allocation3 + $0x10] sm:$0xf] %vm94_vm7, %v117_v33 }
 0x110   :  { %v122_v35 = vld [vmem:[#allocation3 + $0x8] sm:$0xff] }
 0x111   :  { %v249_v36 = vpack.c.bf16 %v122_v35, %v121_v34 }
 0x113   :  { %250 = vmatpush3.bf16.msra.mxu0 %v249_v36 }
 0x114   :  { %243 = vmatprep.subr.mxu0 %v307_v20  ;;  %v123_v38 = vld [vmem:[#allocation3 + $0x10] sm:$0xf] }
 0x117   :  { %244 = vmatpush3.msk.msra.mxu0 %vm134_vm8, %v123_v38 }
 0x118   :  { %246 = vmatmul.mubr.msk.f32.vlgmr.msra.gmra.mrb[0].mxu0 %vm130_vm9, %v120_v37  ;;  %v128_v39 = vpop.permute.xlu1 %127 }
 0x11d   :  { %v213_v41 = vpop.permute.xlu0 %212 }
 0x1eb   :  { %v204_v40 = vpop.f32.mrb[0].mxu0 }
 0x1ec   :  { %v205_v42 = vadd.f32 %v204_v40, %v128_v39  ;;  %v247_v43 = vpop.f32.mrb[1].mxu0 }
 0x1ee   :  { %v215_v44 = vmul.f32 %v213_v41, %v205_v42  ;;  %vm208_vm10 = vcmp.ge.f32.partialorder %v205_v42, 0.0 }
 0x1f0   :  { %v216_v45 = vsel %vm208_vm10, %v205_v42, %v215_v44 }
 0x1f1   :  { %218 = vst.msk [vmem:[#allocation4] sm:$0xff] %vm217_vm11, %v216_v45 }
 0x1f2   :  { %281 = shalt.err (!%p278_p4)
}
 0x1f3   :  { %s282_s12 = scalar_lea.hbm %s375_s4, 128 }
 0x1f4   :  { %p283_p5 = scmp.ne.s32.totalorder %s375_s4, %s282_s12  ;;  %p286_p6 = scmp.lt.u32.totalorder %s282_s12, %s375_s4 }
 0x1f6   :  { %p288_p7 = pnand %p286_p6, %p283_p5 }
 0x1f8   :  { %291 = shalt.err (!%p288_p7)
}
 0x1f9   :  { %228 = dma.vmem_to_hbm [thread:$0]  %s226_s9, 128, %s375_s4, [#allocation5]  }
 0x1fa   :  { %292 = dma.done.wait [#allocation5], 128  }
 0x1fb   :  { %293 = vsyncadd [#allocation5], 4294967168 }
 0x1fc   :  { %232 = vsyncpa [#allocation5], 1 }

</bundles_post_ra>
